<compile_context>
chip_gen: v5e
topology: v5e:2x2
jax: 0.10.0
libtpu: 0.0.40
codegen_flags: <defaults>
</compile_context>

<pallas_src>
import jax
import jax.numpy as jnp
from jax.experimental import pallas as pl
from jax.experimental.pallas import tpu as pltpu


def _round_up(x, m):
    return pl.cdiv(x, m) * m


def _mlp_embed_kernel(ids_ref, emb_ref, w1_ref, b1_ref, w2_ref, b2_ref, out_ref):
    ids = ids_ref[...]                                   # (TM, 1) int32
    tm = ids.shape[0]
    num_emb = emb_ref.shape[0]

    # Embedding lookup as a one-hot (bf16, exact 0/1) matmul on the MXU,
    # accumulated in f32 -> (TM, emb_dim_p).
    iota = jax.lax.broadcasted_iota(jnp.int32, (tm, num_emb), 1)
    onehot = (iota == ids).astype(jnp.bfloat16)
    emb = jnp.dot(onehot, emb_ref[...], preferred_element_type=jnp.float32)

    # Hidden linear + ReLU (bf16 inputs, f32 accumulation / bias add).
    h = jnp.dot(emb.astype(jnp.bfloat16), w1_ref[...],
                preferred_element_type=jnp.float32)
    h = jnp.maximum(h + b1_ref[...], 0.0)

    # Decoder linear (bf16 inputs, f32 accumulation). Output tile is
    # lane-dense: (TM, class_pad) with class_pad a multiple of 128.
    out = jnp.dot(h.astype(jnp.bfloat16), w2_ref[...],
                  preferred_element_type=jnp.float32)
    out_ref[...] = (out + b2_ref[...]).astype(out_ref.dtype)


def embed_mlp_forward(ids, emb_table, w1, b1, w2, b2, *, tm=256):
    """ids: int array of arbitrary shape; returns (*ids.shape, num_class) f32.

    Weights follow torch semantics: emb_table (num_emb, emb_dim); w1/w2 stored
    as (in, out) so the kernel computes y = x @ W + b (== x @ W.T + b in torch
    layout).
    """
    num_emb, emb_dim = emb_table.shape
    hidden_dim = w1.shape[1]
    num_class = w2.shape[1]

    # Pad feature dims to multiples of 128 (lane-dense, MXU-friendly K/N);
    # padded columns/rows are zero so results are unchanged.
    num_emb_p = _round_up(num_emb, 8)
    emb_dim_p = _round_up(emb_dim, 128)
    hidden_p = _round_up(hidden_dim, 128)
    class_p = _round_up(num_class, 128)

    emb_p = jnp.zeros((num_emb_p, emb_dim_p), jnp.bfloat16)
    emb_p = emb_p.at[:num_emb, :emb_dim].set(emb_table.astype(jnp.bfloat16))
    w1_p = jnp.zeros((emb_dim_p, hidden_p), jnp.bfloat16)
    w1_p = w1_p.at[:emb_dim, :hidden_dim].set(w1.astype(jnp.bfloat16))
    b1_p = jnp.zeros((1, hidden_p), jnp.float32)
    b1_p = b1_p.at[:, :hidden_dim].set(b1.reshape(1, hidden_dim))
    w2_p = jnp.zeros((hidden_p, class_p), jnp.bfloat16)
    w2_p = w2_p.at[:hidden_dim, :num_class].set(w2.astype(jnp.bfloat16))
    b2_p = jnp.zeros((1, class_p), jnp.float32)
    b2_p = b2_p.at[:, :num_class].set(b2.reshape(1, num_class))

    orig_shape = ids.shape
    flat = ids.reshape(-1).astype(jnp.int32)
    n = flat.shape[0]
    # Clamp the token tile so tiny inputs aren't padded out to a full 256-row
    # tile; tm stays a multiple of 8 (sublane constraint).
    tm = max(8, min(tm, _round_up(n, 8)))
    n_pad = _round_up(n, tm)
    flat = jnp.pad(flat, (0, n_pad - n))
    ids2d = flat.reshape(n_pad, 1)

    grid = (n_pad // tm,)
    out = pl.pallas_call(
        _mlp_embed_kernel,
        out_shape=jax.ShapeDtypeStruct((n_pad, class_p), jnp.float32),
        grid_spec=pltpu.PrefetchScalarGridSpec(
            num_scalar_prefetch=0,
            grid=grid,
            in_specs=[
                pl.BlockSpec((tm, 1), lambda i: (i, 0)),                 # token ids
                pl.BlockSpec((num_emb_p, emb_dim_p), lambda i: (0, 0)),  # emb table
                pl.BlockSpec((emb_dim_p, hidden_p), lambda i: (0, 0)),   # W1
                pl.BlockSpec((1, hidden_p), lambda i: (0, 0)),           # b1
                pl.BlockSpec((hidden_p, class_p), lambda i: (0, 0)),     # W2
                pl.BlockSpec((1, class_p), lambda i: (0, 0)),            # b2
            ],
            out_specs=pl.BlockSpec((tm, class_p), lambda i: (i, 0)),
        ),
        # Footprint (weights + one token tile, double-buffered) is well under
        # the default scoped-VMEM limit at these sizes, so no vmem_limit_bytes
        # override is needed; the parallel axis shards token tiles across TCs.
        compiler_params=pltpu.CompilerParams(
            dimension_semantics=("parallel",)),
    )(ids2d, emb_p, w1_p, b1_p, w2_p, b2_p)

    return out[:n, :num_class].reshape(*orig_shape, num_class)


def init_params(key, num_emb, emb_dim, hidden_dim, num_class):
    k0, k1, k2, k3, k4 = jax.random.split(key, 5)
    emb_table = jax.random.normal(k0, (num_emb, emb_dim), jnp.float32)
    # stored as (in, out) so the kernel does x @ W + b
    w1 = jax.random.normal(k1, (emb_dim, hidden_dim), jnp.float32) * 0.1
    b1 = jax.random.normal(k2, (hidden_dim,), jnp.float32) * 0.1
    w2 = jax.random.normal(k3, (hidden_dim, num_class), jnp.float32) * 0.1
    b2 = jax.random.normal(k4, (num_class,), jnp.float32) * 0.1
    return emb_table, w1, b1, w2, b2


def reference_forward(ids, emb_table, w1, b1, w2, b2):
    x = emb_table[ids]
    x = x @ w1 + b1
    x = jnp.maximum(x, 0.0)
    return x @ w2 + b2


if __name__ == "__main__":
    num_emb, emb_dim, hidden_dim, num_class = 64, 32, 32, 10
    batch, seq = 2, 8

    key = jax.random.PRNGKey(0)
    kp, kx = jax.random.split(key)
    params = init_params(kp, num_emb, emb_dim, hidden_dim, num_class)
    ids = jax.random.randint(kx, (batch, seq), 0, num_emb, dtype=jnp.int32)

    out = embed_mlp_forward(ids, *params)
    out = jax.block_until_ready(out)

    ref = reference_forward(ids, *params)
    assert out.shape == (batch, seq, num_class), out.shape
    # bf16 matmul inputs (f32 accumulation) -> loosened tolerance vs f32 ref.
    assert jnp.allclose(out, ref, atol=5e-2, rtol=5e-2), float(jnp.abs(out - ref).max())
    print("KERNEL_OK")
</pallas_src>

<mosaic_0001>
module attributes {stable_mosaic.version = 11 : i64} {
  func.func @_mlp_embed_kernel(%arg0: i32, %arg1: memref<16x1xi32, #tpu.memory_space<vmem>>, %arg2: memref<64x128xbf16, #tpu.memory_space<vmem>>, %arg3: memref<128x128xbf16, #tpu.memory_space<vmem>>, %arg4: memref<1x128xf32, #tpu.memory_space<vmem>>, %arg5: memref<128x128xbf16, #tpu.memory_space<vmem>>, %arg6: memref<1x128xf32, #tpu.memory_space<vmem>>, %arg7: memref<16x128xf32, #tpu.memory_space<vmem>>) attributes {dimension_semantics = [#tpu.dimension_semantics<parallel>], iteration_bounds = array<i64: 1>, scalar_prefetch = 0 : i64, scratch_operands = 0 : i64, tpu.core_type = #tpu.core_type<tc>, window_params = [{transform_indices = @transform_0, window_bounds = array<i64: 16, 1>}, {pipeline_mode = #tpu.pipeline_mode<synchronous>, transform_indices = @transform_1, window_bounds = array<i64: 64, 128>}, {pipeline_mode = #tpu.pipeline_mode<synchronous>, transform_indices = @transform_2, window_bounds = array<i64: 128, 128>}, {pipeline_mode = #tpu.pipeline_mode<synchronous>, transform_indices = @transform_3, window_bounds = array<i64: 1, 128>}, {pipeline_mode = #tpu.pipeline_mode<synchronous>, transform_indices = @transform_4, window_bounds = array<i64: 128, 128>}, {pipeline_mode = #tpu.pipeline_mode<synchronous>, transform_indices = @transform_5, window_bounds = array<i64: 1, 128>}, {transform_indices = @transform_6, window_bounds = array<i64: 16, 128>}]} {
    %c0 = arith.constant 0 : index
    %c0_0 = arith.constant 0 : index
    %0 = vector.load %arg1[%c0, %c0_0] : memref<16x1xi32, #tpu.memory_space<vmem>>, vector<16x1xi32>
    %1 = tpu.iota {dimensions = array<i32: 1>} : vector<16x64xi32>
    %2 = vector.broadcast %0 : vector<16x1xi32> to vector<16x64xi32>
    %3 = arith.cmpi eq, %1, %2 : vector<16x64xi32>
    %4 = arith.extui %3 : vector<16x64xi1> to vector<16x64xi32>
    %5 = arith.sitofp %4 : vector<16x64xi32> to vector<16x64xf32>
    %6 = arith.truncf %5 : vector<16x64xf32> to vector<16x64xbf16>
    %c0_1 = arith.constant 0 : index
    %c0_2 = arith.constant 0 : index
    %7 = vector.load %arg2[%c0_1, %c0_2] : memref<64x128xbf16, #tpu.memory_space<vmem>>, vector<64x128xbf16>
    %cst = arith.constant dense<0.000000e+00> : vector<16x128xf32>
    %8 = tpu.matmul %6, %7, %cst {dimension_numbers = #tpu.dot_dimension_numbers<[1], [0], [0], [1], [0, 0, 1, 1], [], []>} : vector<16x64xbf16>, vector<64x128xbf16>, vector<16x128xf32> -> vector<16x128xf32>
    %9 = arith.truncf %8 : vector<16x128xf32> to vector<16x128xbf16>
    %c0_3 = arith.constant 0 : index
    %c0_4 = arith.constant 0 : index
    %10 = vector.load %arg3[%c0_3, %c0_4] : memref<128x128xbf16, #tpu.memory_space<vmem>>, vector<128x128xbf16>
    %cst_5 = arith.constant dense<0.000000e+00> : vector<16x128xf32>
    %11 = tpu.matmul %9, %10, %cst_5 {dimension_numbers = #tpu.dot_dimension_numbers<[1], [0], [0], [1], [0, 0, 1, 1], [], []>} : vector<16x128xbf16>, vector<128x128xbf16>, vector<16x128xf32> -> vector<16x128xf32>
    %c0_6 = arith.constant 0 : index
    %c0_7 = arith.constant 0 : index
    %12 = vector.load %arg4[%c0_6, %c0_7] : memref<1x128xf32, #tpu.memory_space<vmem>>, vector<1x128xf32>
    %13 = vector.broadcast %12 : vector<1x128xf32> to vector<16x128xf32>
    %14 = arith.addf %11, %13 : vector<16x128xf32>
    %cst_8 = arith.constant 0.000000e+00 : f32
    %15 = vector.broadcast %cst_8 : f32 to vector<16x128xf32>
    %16 = arith.maximumf %14, %15 : vector<16x128xf32>
    %17 = arith.truncf %16 : vector<16x128xf32> to vector<16x128xbf16>
    %c0_9 = arith.constant 0 : index
    %c0_10 = arith.constant 0 : index
    %18 = vector.load %arg5[%c0_9, %c0_10] : memref<128x128xbf16, #tpu.memory_space<vmem>>, vector<128x128xbf16>
    %cst_11 = arith.constant dense<0.000000e+00> : vector<16x128xf32>
    %19 = tpu.matmul %17, %18, %cst_11 {dimension_numbers = #tpu.dot_dimension_numbers<[1], [0], [0], [1], [0, 0, 1, 1], [], []>} : vector<16x128xbf16>, vector<128x128xbf16>, vector<16x128xf32> -> vector<16x128xf32>
    %c0_12 = arith.constant 0 : index
    %c0_13 = arith.constant 0 : index
    %20 = vector.load %arg6[%c0_12, %c0_13] : memref<1x128xf32, #tpu.memory_space<vmem>>, vector<1x128xf32>
    %21 = vector.broadcast %20 : vector<1x128xf32> to vector<16x128xf32>
    %22 = arith.addf %19, %21 : vector<16x128xf32>
    %c0_14 = arith.constant 0 : index
    %c0_15 = arith.constant 0 : index
    %23 = vector.load %arg7[%c0_14, %c0_15] : memref<16x128xf32, #tpu.memory_space<vmem>>, vector<16x128xf32>
    tpu.vector_store %arg7[%c0_14, %c0_15], %22 {strides = array<i32>} : memref<16x128xf32, #tpu.memory_space<vmem>>, vector<16x128xf32>,
    return
  }
  func.func @transform_0(%arg0: i32) -> (i32, i32) {
    %c0_i32 = arith.constant 0 : i32
    %c0_i32_0 = arith.constant 0 : i32
    return %arg0, %c0_i32 : i32, i32
  }
  func.func @transform_1(%arg0: i32) -> (i32, i32) {
    %c0_i32 = arith.constant 0 : i32
    %c0_i32_0 = arith.constant 0 : i32
    %c0_i32_1 = arith.constant 0 : i32
    return %c0_i32, %c0_i32_0 : i32, i32
  }
  func.func @transform_2(%arg0: i32) -> (i32, i32) {
    %c0_i32 = arith.constant 0 : i32
    %c0_i32_0 = arith.constant 0 : i32
    %c0_i32_1 = arith.constant 0 : i32
    return %c0_i32, %c0_i32_0 : i32, i32
  }
  func.func @transform_3(%arg0: i32) -> (i32, i32) {
    %c0_i32 = arith.constant 0 : i32
    %c0_i32_0 = arith.constant 0 : i32
    %c0_i32_1 = arith.constant 0 : i32
    return %c0_i32, %c0_i32_0 : i32, i32
  }
  func.func @transform_4(%arg0: i32) -> (i32, i32) {
    %c0_i32 = arith.constant 0 : i32
    %c0_i32_0 = arith.constant 0 : i32
    %c0_i32_1 = arith.constant 0 : i32
    return %c0_i32, %c0_i32_0 : i32, i32
  }
  func.func @transform_5(%arg0: i32) -> (i32, i32) {
    %c0_i32 = arith.constant 0 : i32
    %c0_i32_0 = arith.constant 0 : i32
    %c0_i32_1 = arith.constant 0 : i32
    return %c0_i32, %c0_i32_0 : i32, i32
  }
  func.func @transform_6(%arg0: i32) -> (i32, i32) {
    %c0_i32 = arith.constant 0 : i32
    %c0_i32_0 = arith.constant 0 : i32
    return %arg0, %c0_i32 : i32, i32
  }
}

</mosaic_0001>

<bundles_post_ra>
// kernel: tpu_custom_call.1
= control target key start
LH: loop header
LB: loop body
LE: loop exit
PB: predicated region body
PF: predicated region fallthrough
CT: control target
= control target key end

     0   :  { %11 = vsyncpa [#allocation3], 0  ;;  %s616_s0 = inlined_call_operand.vmem [shape: s32[16,1], index: 0, kind: input, shape index: {}]   ;;  %s617_s1 = inlined_call_operand.hbm [shape: bf16[64,128], index: 1, kind: input, shape index: {}]   ;;  %s618_s2 = inlined_call_operand.hbm [shape: bf16[128,128], index: 2, kind: input, shape index: {}]   ;;  %s619_s3 = inlined_call_operand.vmem [shape: f32[1,128], index: 3, kind: input, shape index: {}]   ;;  %s620_s4 = inlined_call_operand.hbm [shape: bf16[128,128], index: 4, kind: input, shape index: {}]   ;;  %s621_s5 = inlined_call_operand.vmem [shape: f32[1,128], index: 5, kind: input, shape index: {}]   ;;  %s622_s6 = inlined_call_operand.hbm [shape: f32[16,128], index: 6, kind: output, shape index: {}]  }
   0x1   :  { %12 = vsyncpa [#allocation6], 0 }
   0x2   :  { %13 = vsyncpa [#allocation4], 0  ;;  %s33_s23 = sshll.u32 %s618_s2, 4  ;;  %s547_s24 = smov [#allocation5]   ;;  %s34_s23 = int_to_ptr.hbm [resolvable:$true] %s33_s23 }
   0x3   :  { %s35_s25 = sshll.u32 %s547_s24, 4  ;;  %s20_s28 = sshll.u32 %s617_s1, 4  ;;  %s36_s25 = int_to_ptr.vmem [resolvable:$true] %s35_s25  ;;  %s21_s28 = int_to_ptr.hbm [resolvable:$true] %s20_s28 }
   0x4   :  { %s548_s29 = smov 64   ;;  %s549_s30 = smov 4  }
   0x5   :  { %41 = dma.hbm_to_vmem [thread:$0]  %s34_s23, 1024, %s36_s25, [#allocation6], %s548_s29, %s548_s29, %s549_s30  }
   0x6   :  { %s550_s7 = smov [#allocation2]   ;;  %s48_s11 = sshll.u32 %s620_s4, 4  ;;  %s49_s11 = int_to_ptr.hbm [resolvable:$true] %s48_s11 }
   0x7   :  { %s22_s8 = sshll.u32 %s550_s7, 4  ;;  %s551_s2 = smov [#allocation7]   ;;  %s23_s8 = int_to_ptr.vmem [resolvable:$true] %s22_s8 }
   0x8   :  { %28 = dma.hbm_to_vmem [thread:$0]  %s21_s28, 512, %s23_s8, [#allocation3], %s548_s29, %s548_s29, %s549_s30  }
   0x9   :  { %s50_s12 = sshll.u32 %s551_s2, 4  ;;  %s51_s12 = int_to_ptr.vmem [resolvable:$true] %s50_s12 }
   0xa   :  { %56 = dma.hbm_to_vmem [thread:$0]  %s49_s11, 1024, %s51_s12, [#allocation6], %s548_s29, %s548_s29, %s549_s30  }
   0xb   :  { %541 = dma.done.wait [#allocation3], 512  }
   0xc   :  { %542 = vsyncadd [#allocation3], 4294966784 }
   0xd   :  { %543 = dma.done.wait [#allocation6], 2048  }
   0xe   :  { %544 = vsyncadd [#allocation6], 4294965248  ;;  %v552_v0 = vmov 0   ;;  %v72_v1 = vld [vmem:[%s616_s0] sm:$0xff]  ;;  %v415_v2 = vld [vmem:[#allocation2 + $0x18] sm:$0xff]  ;;  %v74_v12 = vlaneseq  ;;  %v553_v16 = vmov 0.0  }
   0xf   :  { %442 = vset.pattern.permute.xlu0 %v552_v0  ;;  %129 = vmatpush.bf16.msra.mxu0 %v415_v2  ;;  %v73_v3 = vld [vmem:[%s616_s0 + $0x8] sm:$0xff]  ;;  %v414_v4 = vld [vmem:[#allocation2 + $0x10] sm:$0xff]  ;;  %v412_v6 = vld [vmem:[#allocation2] sm:$0xff]  ;;  %vm121_vm2 = vcmask 523264   ;;  %s554_s18 = smov [#allocation8]   ;;  %s555_s22 = smov 128  }
  0x10   :  { %77 = vperm.xlu0 %442, %v72_v1   ;;  %v413_v5 = vld [vmem:[#allocation2 + $0x8] sm:$0xff]  ;;  %v423_v7 = vld [vmem:[#allocation5 + $0x38] sm:$0xff]  ;;  %v422_v8 = vld [vmem:[#allocation5 + $0x30] sm:$0xff]  ;;  %v75_v14 = vand.u32 127, %v74_v12  ;;  %s313_s19 = sshll.u32 %s554_s18, 4  ;;  %s556_s23 = smov 8   ;;  %s314_s19 = int_to_ptr.vmem [resolvable:$true] %s313_s19 }
  0x11   :  { %208 = vmatpush.bf16.msra.mxu1 %v423_v7  ;;  %v421_v9 = vld [vmem:[#allocation5 + $0x28] sm:$0xff]  ;;  %v420_v10 = vld [vmem:[#allocation5 + $0x20] sm:$0xff]  ;;  %v419_v11 = vld [vmem:[#allocation5 + $0x18] sm:$0xff] }
  0x12   :  { %v418_v20 = vld [vmem:[#allocation5 + $0x10] sm:$0xff]  ;;  %v417_v21 = vld [vmem:[#allocation5 + $0x8] sm:$0xff]  ;;  %v416_v22 = vld [vmem:[#allocation5] sm:$0xff] }
  0x13   :  { %130 = vmatpush.bf16.msra.mxu0 %v414_v4  ;;  %v431_v23 = vld [vmem:[#allocation7 + $0x38] sm:$0xff]  ;;  %v430_v24 = vld [vmem:[#allocation7 + $0x30] sm:$0xff]  ;;  %v429_v25 = vld [vmem:[#allocation7 + $0x28] sm:$0xff] }
  0x14   :  { %293 = vmatpush.bf16.msra.mxu2 %v431_v23  ;;  %v428_v26 = vld [vmem:[#allocation7 + $0x20] sm:$0xff]  ;;  %v427_v30 = vld [vmem:[#allocation7 + $0x18] sm:$0xff]  ;;  %v426_v31 = vld [vmem:[#allocation7 + $0x10] sm:$0xff] }
  0x15   :  { %209 = vmatpush.bf16.msra.mxu1 %v422_v8  ;;  %v425_v32 = vld [vmem:[#allocation7 + $0x8] sm:$0xff]  ;;  %v424_v33 = vld [vmem:[#allocation7] sm:$0xff] }
  0x16   :  { %v443_v35 = vld [vmem:[%s619_s3] ss:$0 sm:$0xff]  ;;  %s315_s3 = sshll.u32 %s622_s6, 4  ;;  %s316_s3 = int_to_ptr.hbm [resolvable:$true] %s315_s3 }
  0x17   :  { %131 = vmatpush.bf16.msra.mxu0 %v413_v5  ;;  %v444_v42 = vld [vmem:[%s621_s5] ss:$0 sm:$0xff] }
  0x18   :  { %80 = vperm.xlu0 %442, %v73_v3   ;;  %294 = vmatpush.bf16.msra.mxu2 %v430_v24 }
  0x19   :  { %210 = vmatpush.bf16.msra.mxu1 %v421_v9 }
  0x1b   :  { %132 = vmatpush.bf16.msra.mxu0 %v412_v6 }
  0x1c   :  { %295 = vmatpush.bf16.msra.mxu2 %v429_v25 }
  0x1d   :  { %211 = vmatpush.bf16.msra.mxu1 %v420_v10 }
  0x20   :  { %296 = vmatpush.bf16.msra.mxu2 %v428_v26 }
  0x21   :  { %212 = vmatpush.bf16.msra.mxu1 %v419_v11 }
  0x24   :  { %297 = vmatpush.bf16.msra.mxu2 %v427_v30 }
  0x25   :  { %213 = vmatpush.bf16.msra.mxu1 %v418_v20 }
  0x28   :  { %298 = vmatpush.bf16.msra.mxu2 %v426_v31 }
  0x29   :  { %214 = vmatpush.bf16.msra.mxu1 %v417_v21 }
  0x2c   :  { %299 = vmatpush.bf16.msra.mxu2 %v425_v32 }
  0x2d   :  { %215 = vmatpush.bf16.msra.mxu1 %v416_v22 }
  0x30   :  { %300 = vmatpush.bf16.msra.mxu2 %v424_v33 }
  0x82   :  { %v78_v13 = vpop.permute.xlu0 %77 }
  0x83   :  { %vm82_vm0 = vcmp.eq.s32.totalorder %v75_v14, %v78_v13 }
  0x84   :  { %v329_v17 = vsel %vm82_vm0, 1.0, %v553_v16 }
  0x8a   :  { %v81_v15 = vpop.permute.xlu0 %80 }
  0x8b   :  { %vm83_vm1 = vcmp.eq.s32.totalorder %v75_v14, %v81_v15 }
  0x8c   :  { %v330_v18 = vsel %vm83_vm1, 1.0, %v553_v16 }
  0x8d   :  { %v88_v19 = vpack.c.bf16 %v330_v18, %v329_v17 }
  0x8f   :  { %347 = vmatmul.msk.bf16.vlgmr.msra.gmra.mxu0 %vm121_vm2, %v88_v19 }
 0x10c   :  { %v134_v27 = vpop.f32.mrf.mxu0 }
 0x114   :  { %v136_v28 = vpop.f32.mrf.mxu0 }
 0x115   :  { %v139_v29 = vpack.c.bf16 %v136_v28, %v134_v27 }
 0x117   :  { %216 = vmatmul.bf16.vlgmr.msra.gmra.mxu1 %v139_v29 }
 0x194   :  { %v217_v34 = vpop.f32.mrf.mxu1 }
 0x195   :  { %v218_v36 = vadd.f32 %v443_v35, %v217_v34 }
 0x197   :  { %v222_v39 = vmax.f32 %v218_v36, 0.0 }
 0x19c   :  { %v219_v37 = vpop.f32.mrf.mxu1 }
 0x19d   :  { %v220_v38 = vadd.f32 %v443_v35, %v219_v37 }
 0x19f   :  { %v223_v40 = vmax.f32 %v220_v38, 0.0 }
 0x1a1   :  { %v224_v41 = vpack.c.bf16 %v223_v40, %v222_v39 }
 0x1a3   :  { %301 = vmatmul.bf16.vlgmr.msra.gmra.mxu2 %v224_v41 }
 0x226   :  { %v302_v43 = vpop.f32.mrf.mxu2 }
 0x227   :  { %v303_v44 = vadd.f32 %v444_v42, %v302_v43 }
 0x229   :  { %307 = vst [vmem:[#allocation8] sm:$0xff] %v303_v44 }
 0x22e   :  { %v304_v45 = vpop.f32.mrf.mxu2 }
 0x22f   :  { %v305_v46 = vadd.f32 %v444_v42, %v304_v45 }
 0x231   :  { %308 = vst [vmem:[#allocation8 + $0x8] sm:$0xff] %v305_v46 }
 0x232   :  { %321 = dma.vmem_to_hbm [thread:$0]  %s314_s19, 256, %s316_s3, [#allocation4], %s555_s22, %s555_s22, %s556_s23  }
 0x233   :  { %545 = dma.done.wait [#allocation4], 256  }
 0x234   :  { %546 = vsyncadd [#allocation4], 4294967040 }
 0x235   :  { %326 = vsyncpa [#allocation3], 1 }
 0x236   :  { %327 = vsyncpa [#allocation6], 1 }
 0x237   :  { %328 = vsyncpa [#allocation4], 1 }

</bundles_post_ra>
